<compile_context>
chip_gen: v7x
topology: tpu7x:2x2x1
jax: 0.10.0
libtpu: 0.0.40
codegen_flags: <defaults>
</compile_context>

<pallas_src>
import jax
import jax.numpy as jnp
from jax.experimental import pallas as pl
from jax.experimental.pallas import tpu as pltpu


def _pooled_logits_kernel(x_ref, w_ref, b_ref, mask_ref,
                          pooled_ref, lse_ref, m_sc, l_sc):
    # x_ref:      (tb*S, D) bf16   tb batch rows x S tokens (batch folded into M)
    # w_ref:      (D, tv)   bf16   streamed vocab tile of the (transposed) weight
    # b_ref:      (1, tv)   f32    bias tile
    # mask_ref:   (tb, tv)  i32    exist_mask tile
    # pooled_ref: (tb, tv)  f32    masked, seq-pooled logits (output 0)
    # lse_ref:    (tb, 1)   f32    logsumexp over the full vocab (output 1)
    # m_sc, l_sc: (tb, 1)   f32    running max / sum-exp scratch (online logsumexp)
    v = pl.program_id(1)
    tb = pooled_ref.shape[0]
    seq = x_ref.shape[0] // tb

    @pl.when(v == 0)
    def _():
        m_sc[...] = jnp.full_like(m_sc, -jnp.inf)
        l_sc[...] = jnp.zeros_like(l_sc)

    # (tb*S, D) @ (D, tv) on the MXU, f32 accumulation.
    logits = jnp.dot(x_ref[...], w_ref[...],
                     preferred_element_type=jnp.float32)                 # (tb*S, tv)

    # Per-batch max over the sequence dimension, then bias (constant over seq).
    pooled = jnp.max(logits.reshape(tb, seq, logits.shape[-1]), axis=1)  # (tb, tv)
    pooled = pooled + b_ref[...]

    # masked_fill_(exist_mask == 1, -1e10)
    pooled = jnp.where(mask_ref[...] == 1, jnp.float32(-10000000000.0), pooled)
    pooled_ref[...] = pooled

    # Online logsumexp across vocab tiles.
    m_new = jnp.maximum(m_sc[...], jnp.max(pooled, axis=-1, keepdims=True))
    l_sc[...] = (l_sc[...] * jnp.exp(m_sc[...] - m_new)
                 + jnp.sum(jnp.exp(pooled - m_new), axis=-1, keepdims=True))
    m_sc[...] = m_new

    @pl.when(v == pl.num_programs(1) - 1)
    def _():
        lse_ref[...] = m_sc[...] + jnp.log(l_sc[...])


def _log_softmax_finalize_kernel(pooled_ref, lse_ref, out_ref):
    # log_softmax = pooled - logsumexp (broadcast over the vocab tile).
    out_ref[...] = pooled_ref[...] - lse_ref[...]


def _pick_batch_tile(B):
    tb = min(B, 8)
    while B % tb != 0:
        tb -= 1
    return tb


def _pick_vocab_tile(V, D):
    if V <= 2048 and V % 128 == 0:
        return V
    # Keep the double-buffered bf16 weight tile around <= ~8 MiB: 2 * D * tv * 2B.
    budget_elems = (2 * 1024 * 1024) // max(D, 1)
    tv = max(128, min(2048, (budget_elems // 128) * 128))
    while tv > 128 and V % tv != 0:
        tv -= 128
    return tv if V % tv == 0 else V


def lm_head_forward(x, weight_t, bias, exist_mask):
    """x: (B, S, D) f32, weight_t: (D, V) f32, bias: (V,) f32, exist_mask: (B, V) int.

    Returns log_softmax(masked_fill(max_s(x @ W^T + b), mask == 1, -1e10)) as (B, V) f32.
    """
    B, S, D = x.shape
    V = weight_t.shape[1]

    tb = _pick_batch_tile(B)
    tv = _pick_vocab_tile(V, D)
    nb, nv = B // tb, V // tv

    # bf16 streaming dtypes for the MXU operands; f32 everywhere else.
    x_flat = x.reshape(B * S, D).astype(jnp.bfloat16)
    w_bf16 = weight_t.astype(jnp.bfloat16)
    bias2d = bias.reshape(1, V).astype(jnp.float32)
    mask = exist_mask.astype(jnp.int32)
    # TODO(synk): mask could be streamed as int8 (4x less DMA); kept int32 for robust lowering.

    cost1 = pl.CostEstimate(
        flops=2 * B * S * D * V,
        transcendentals=B * V,
        bytes_accessed=(B * S * D * 2 + nb * D * V * 2 + B * V * 4  # x, weight, mask
                        + B * V * 4 + B * 4))                        # pooled out, lse out

    pooled, lse = pl.pallas_call(
        _pooled_logits_kernel,
        out_shape=(jax.ShapeDtypeStruct((B, V), jnp.float32),
                   jax.ShapeDtypeStruct((B, 1), jnp.float32)),
        grid_spec=pltpu.PrefetchScalarGridSpec(
            num_scalar_prefetch=0,
            grid=(nb, nv),                                            # vocab (lse reduction) axis last
            in_specs=[
                pl.BlockSpec((tb * S, D), lambda b, v: (b, 0)),       # x rows (resident across v)
                pl.BlockSpec((D, tv),     lambda b, v: (0, v)),       # streamed weight tile
                pl.BlockSpec((1, tv),     lambda b, v: (0, v)),       # bias tile
                pl.BlockSpec((tb, tv),    lambda b, v: (b, v)),       # exist_mask tile
            ],
            out_specs=[
                pl.BlockSpec((tb, tv), lambda b, v: (b, v)),          # pooled masked logits
                pl.BlockSpec((tb, 1),  lambda b, v: (b, 0)),          # logsumexp (resident across v)
            ],
            scratch_shapes=[pltpu.VMEM((tb, 1), jnp.float32),
                            pltpu.VMEM((tb, 1), jnp.float32)],
        ),
        compiler_params=pltpu.CompilerParams(
            dimension_semantics=("parallel", "arbitrary"),
            vmem_limit_bytes=32 * 1024 * 1024),
        cost_estimate=cost1,
    )(x_flat, w_bf16, bias2d, mask)

    cost2 = pl.CostEstimate(flops=B * V, transcendentals=0,
                            bytes_accessed=3 * B * V * 4)

    out = pl.pallas_call(
        _log_softmax_finalize_kernel,
        out_shape=jax.ShapeDtypeStruct((B, V), jnp.float32),
        grid_spec=pltpu.PrefetchScalarGridSpec(
            num_scalar_prefetch=0,
            grid=(nb, nv),
            in_specs=[
                pl.BlockSpec((tb, tv), lambda b, v: (b, v)),
                pl.BlockSpec((tb, 1),  lambda b, v: (b, 0)),
            ],
            out_specs=pl.BlockSpec((tb, tv), lambda b, v: (b, v)),
        ),
        compiler_params=pltpu.CompilerParams(
            dimension_semantics=("parallel", "parallel")),
        input_output_aliases={0: 0},    # write log-probs in place over the pooled buffer
        cost_estimate=cost2,
    )(pooled, lse)

    return out


if __name__ == "__main__":
    # Small shapes consistent with the module: (batch, seq, d_model) -> (batch, vocab).
    B, S, D, V = 2, 8, 32, 128

    key = jax.random.PRNGKey(0)
    kx, kw, kb, km = jax.random.split(key, 4)

    # nn.Linear-style init: uniform(-1/sqrt(D), 1/sqrt(D)); torch weight is (out, in).
    bound = 1.0 / (D ** 0.5)
    weight = jax.random.uniform(kw, (V, D), jnp.float32, -bound, bound)
    bias = jax.random.uniform(kb, (V,), jnp.float32, -bound, bound)
    weight_t = weight.T                                               # (D, V) for the kernel

    x = jax.random.normal(kx, (B, S, D), jnp.float32)
    exist_mask = (jax.random.uniform(km, (B, V)) < 0.25).astype(jnp.int32)

    out = lm_head_forward(x, weight_t, bias, exist_mask)
    jax.block_until_ready(out)

    # Pure-JAX reference (same math; operands rounded to bf16 like the kernel's streaming dtype).
    x_r = x.astype(jnp.bfloat16).astype(jnp.float32)
    w_r = weight_t.astype(jnp.bfloat16).astype(jnp.float32)
    logits = jnp.einsum("bsd,dv->bsv", x_r, w_r, precision="highest") + bias
    pooled = jnp.max(logits, axis=1)
    pooled = jnp.where(exist_mask == 1, -10000000000.0, pooled)
    ref = jax.nn.log_softmax(pooled, axis=1)
    assert jnp.allclose(out, ref, atol=2e-3, rtol=2e-3), "mismatch vs reference"

    print("KERNEL_OK")
</pallas_src>

<mosaic_0001>
module attributes {stable_mosaic.version = 11 : i64} {
  func.func @_pooled_logits_kernel(%arg0: i32, %arg1: i32, %arg2: memref<16x32xbf16, #tpu.memory_space<vmem>>, %arg3: memref<32x128xbf16, #tpu.memory_space<vmem>>, %arg4: memref<1x128xf32, #tpu.memory_space<vmem>>, %arg5: memref<2x128xi32, #tpu.memory_space<vmem>>, %arg6: memref<2x128xf32, #tpu.memory_space<vmem>>, %arg7: memref<2x1xf32, #tpu.memory_space<vmem>>, %arg8: memref<2x1xf32, #tpu.memory_space<vmem>>, %arg9: memref<2x1xf32, #tpu.memory_space<vmem>>) attributes {dimension_semantics = [#tpu.dimension_semantics<parallel>, #tpu.dimension_semantics<arbitrary>], iteration_bounds = array<i64: 1, 1>, scalar_prefetch = 0 : i64, scratch_operands = 2 : i64, tpu.core_type = #tpu.core_type<tc>, window_params = [{transform_indices = @transform_0, window_bounds = array<i64: 16, 32>}, {transform_indices = @transform_1, window_bounds = array<i64: 32, 128>}, {transform_indices = @transform_2, window_bounds = array<i64: 1, 128>}, {transform_indices = @transform_3, window_bounds = array<i64: 2, 128>}, {transform_indices = @transform_4, window_bounds = array<i64: 2, 128>}, {transform_indices = @transform_5, window_bounds = array<i64: 2, 1>}]} {
    %c0_i32 = arith.constant 0 : i32
    %0 = arith.cmpi eq, %arg1, %c0_i32 : i32
    %1 = arith.extui %0 : i1 to i32
    %c0_i32_0 = arith.constant 0 : i32
    %2 = arith.cmpi ne, %1, %c0_i32_0 : i32
    scf.if %2 {
      %cst_26 = arith.constant 0xFF800000 : f32
      %37 = vector.broadcast %cst_26 : f32 to vector<2x1xf32>
      %c0_27 = arith.constant 0 : index
      %c0_28 = arith.constant 0 : index
      %38 = vector.load %arg8[%c0_27, %c0_28] : memref<2x1xf32, #tpu.memory_space<vmem>>, vector<2x1xf32>
      tpu.vector_store %arg8[%c0_27, %c0_28], %37 {strides = array<i32>} : memref<2x1xf32, #tpu.memory_space<vmem>>, vector<2x1xf32>,
      %cst_29 = arith.constant 0.000000e+00 : f32
      %39 = vector.broadcast %cst_29 : f32 to vector<2x1xf32>
      %c0_30 = arith.constant 0 : index
      %c0_31 = arith.constant 0 : index
      %40 = vector.load %arg9[%c0_30, %c0_31] : memref<2x1xf32, #tpu.memory_space<vmem>>, vector<2x1xf32>
      tpu.vector_store %arg9[%c0_30, %c0_31], %39 {strides = array<i32>} : memref<2x1xf32, #tpu.memory_space<vmem>>, vector<2x1xf32>,
    } else {
    }
    %c0 = arith.constant 0 : index
    %c0_1 = arith.constant 0 : index
    %3 = vector.load %arg2[%c0, %c0_1] : memref<16x32xbf16, #tpu.memory_space<vmem>>, vector<16x32xbf16>
    %c0_2 = arith.constant 0 : index
    %c0_3 = arith.constant 0 : index
    %4 = vector.load %arg3[%c0_2, %c0_3] : memref<32x128xbf16, #tpu.memory_space<vmem>>, vector<32x128xbf16>
    %cst = arith.constant dense<0.000000e+00> : vector<16x128xf32>
    %5 = tpu.matmul %3, %4, %cst {dimension_numbers = #tpu.dot_dimension_numbers<[1], [0], [0], [1], [0, 0, 1, 1], [], []>} : vector<16x32xbf16>, vector<32x128xbf16>, vector<16x128xf32> -> vector<16x128xf32>
    %6 = vector.shape_cast %5 : vector<16x128xf32> to vector<2x8x128xf32>
    %cst_4 = arith.constant dense<0xFF800000> : vector<2x128xf32>
    %7 = vector.multi_reduction <maximumf>, %6, %cst_4 [1] : vector<2x8x128xf32> to vector<2x128xf32>
    %c0_5 = arith.constant 0 : index
    %c0_6 = arith.constant 0 : index
    %8 = vector.load %arg4[%c0_5, %c0_6] : memref<1x128xf32, #tpu.memory_space<vmem>>, vector<1x128xf32>
    %9 = vector.broadcast %8 : vector<1x128xf32> to vector<2x128xf32>
    %10 = arith.addf %7, %9 : vector<2x128xf32>
    %c0_7 = arith.constant 0 : index
    %c0_8 = arith.constant 0 : index
    %11 = vector.load %arg5[%c0_7, %c0_8] : memref<2x128xi32, #tpu.memory_space<vmem>>, vector<2x128xi32>
    %c1_i32 = arith.constant 1 : i32
    %12 = vector.broadcast %c1_i32 : i32 to vector<2x128xi32>
    %13 = arith.cmpi eq, %11, %12 : vector<2x128xi32>
    %cst_9 = arith.constant -1.000000e+10 : f32
    %14 = vector.broadcast %cst_9 : f32 to vector<2x128xf32>
    %15 = arith.select %13, %14, %10 : vector<2x128xi1>, vector<2x128xf32>
    %c0_10 = arith.constant 0 : index
    %c0_11 = arith.constant 0 : index
    %16 = vector.load %arg6[%c0_10, %c0_11] : memref<2x128xf32, #tpu.memory_space<vmem>>, vector<2x128xf32>
    tpu.vector_store %arg6[%c0_10, %c0_11], %15 {strides = array<i32>} : memref<2x128xf32, #tpu.memory_space<vmem>>, vector<2x128xf32>,
    %c0_12 = arith.constant 0 : index
    %c0_13 = arith.constant 0 : index
    %17 = vector.load %arg8[%c0_12, %c0_13] : memref<2x1xf32, #tpu.memory_space<vmem>>, vector<2x1xf32>
    %cst_14 = arith.constant dense<0xFF800000> : vector<2xf32>
    %18 = vector.multi_reduction <maximumf>, %15, %cst_14 [1] : vector<2x128xf32> to vector<2xf32>
    %19 = vector.shape_cast %18 : vector<2xf32> to vector<2x1xf32>
    %20 = arith.maximumf %17, %19 : vector<2x1xf32>
    %c0_15 = arith.constant 0 : index
    %c0_16 = arith.constant 0 : index
    %21 = vector.load %arg9[%c0_15, %c0_16] : memref<2x1xf32, #tpu.memory_space<vmem>>, vector<2x1xf32>
    %c0_17 = arith.constant 0 : index
    %c0_18 = arith.constant 0 : index
    %22 = vector.load %arg8[%c0_17, %c0_18] : memref<2x1xf32, #tpu.memory_space<vmem>>, vector<2x1xf32>
    %23 = arith.subf %22, %20 : vector<2x1xf32>
    %24 = math.exp %23 : vector<2x1xf32>
    %25 = arith.mulf %21, %24 : vector<2x1xf32>
    %26 = vector.broadcast %20 : vector<2x1xf32> to vector<2x128xf32>
    %27 = arith.subf %15, %26 : vector<2x128xf32>
    %28 = math.exp %27 : vector<2x128xf32>
    %cst_19 = arith.constant dense<0.000000e+00> : vector<2xf32>
    %29 = vector.multi_reduction <add>, %28, %cst_19 [1] : vector<2x128xf32> to vector<2xf32>
    %30 = vector.shape_cast %29 : vector<2xf32> to vector<2x1xf32>
    %31 = arith.addf %25, %30 : vector<2x1xf32>
    %c0_20 = arith.constant 0 : index
    %c0_21 = arith.constant 0 : index
    %32 = vector.load %arg9[%c0_20, %c0_21] : memref<2x1xf32, #tpu.memory_space<vmem>>, vector<2x1xf32>
    tpu.vector_store %arg9[%c0_20, %c0_21], %31 {strides = array<i32>} : memref<2x1xf32, #tpu.memory_space<vmem>>, vector<2x1xf32>,
    %c0_22 = arith.constant 0 : index
    %c0_23 = arith.constant 0 : index
    %33 = vector.load %arg8[%c0_22, %c0_23] : memref<2x1xf32, #tpu.memory_space<vmem>>, vector<2x1xf32>
    tpu.vector_store %arg8[%c0_22, %c0_23], %20 {strides = array<i32>} : memref<2x1xf32, #tpu.memory_space<vmem>>, vector<2x1xf32>,
    %c0_i32_24 = arith.constant 0 : i32
    %34 = arith.cmpi eq, %arg1, %c0_i32_24 : i32
    %35 = arith.extui %34 : i1 to i32
    %c0_i32_25 = arith.constant 0 : i32
    %36 = arith.cmpi ne, %35, %c0_i32_25 : i32
    scf.if %36 {
      %c0_26 = arith.constant 0 : index
      %c0_27 = arith.constant 0 : index
      %37 = vector.load %arg8[%c0_26, %c0_27] : memref<2x1xf32, #tpu.memory_space<vmem>>, vector<2x1xf32>
      %c0_28 = arith.constant 0 : index
      %c0_29 = arith.constant 0 : index
      %38 = vector.load %arg9[%c0_28, %c0_29] : memref<2x1xf32, #tpu.memory_space<vmem>>, vector<2x1xf32>
      %39 = math.log %38 : vector<2x1xf32>
      %40 = arith.addf %37, %39 : vector<2x1xf32>
      %c0_30 = arith.constant 0 : index
      %c0_31 = arith.constant 0 : index
      %41 = vector.load %arg7[%c0_30, %c0_31] : memref<2x1xf32, #tpu.memory_space<vmem>>, vector<2x1xf32>
      tpu.vector_store %arg7[%c0_30, %c0_31], %40 {strides = array<i32>} : memref<2x1xf32, #tpu.memory_space<vmem>>, vector<2x1xf32>,
    } else {
    }
    return
  }
  func.func @transform_0(%arg0: i32, %arg1: i32) -> (i32, i32) {
    %c0_i32 = arith.constant 0 : i32
    %c0_i32_0 = arith.constant 0 : i32
    return %arg0, %c0_i32 : i32, i32
  }
  func.func @transform_1(%arg0: i32, %arg1: i32) -> (i32, i32) {
    %c0_i32 = arith.constant 0 : i32
    %c0_i32_0 = arith.constant 0 : i32
    return %c0_i32, %arg1 : i32, i32
  }
  func.func @transform_2(%arg0: i32, %arg1: i32) -> (i32, i32) {
    %c0_i32 = arith.constant 0 : i32
    %c0_i32_0 = arith.constant 0 : i32
    return %c0_i32, %arg1 : i32, i32
  }
  func.func @transform_3(%arg0: i32, %arg1: i32) -> (i32, i32) {
    %c0_i32 = arith.constant 0 : i32
    return %arg0, %arg1 : i32, i32
  }
  func.func @transform_4(%arg0: i32, %arg1: i32) -> (i32, i32) {
    %c0_i32 = arith.constant 0 : i32
    return %arg0, %arg1 : i32, i32
  }
  func.func @transform_5(%arg0: i32, %arg1: i32) -> (i32, i32) {
    %c0_i32 = arith.constant 0 : i32
    %c0_i32_0 = arith.constant 0 : i32
    return %arg0, %c0_i32 : i32, i32
  }
}

</mosaic_0001>

<bundles_post_ra>
// kernel: tpu_custom_call.1
= control target key start
LH: loop header
LB: loop body
LE: loop exit
PB: predicated region body
PF: predicated region fallthrough
CT: control target
= control target key end

     0   :  { %11 = vsyncpa [#allocation5], 0  ;;  %s408_s0 = inlined_call_operand.hbm [shape: bf16[16,32], index: 0, kind: input, shape index: {}]   ;;  %s409_s1 = inlined_call_operand.hbm [shape: bf16[32,128], index: 1, kind: input, shape index: {}]   ;;  %s410_s2 = inlined_call_operand.vmem [shape: f32[1,128], index: 2, kind: input, shape index: {}]   ;;  %s411_s3 = inlined_call_operand.vmem [shape: s32[2,128], index: 3, kind: input, shape index: {}]   ;;  %s412_s4 = inlined_call_operand.hbm [shape: f32[2,128], index: 4, kind: output, shape index: {0}]   ;;  %s413_s5 = inlined_call_operand.vmem [shape: f32[2,1], index: 5, kind: output, shape index: {1}]  }
   0x1   :  { %12 = vsyncpa [#allocation8], 0 }
   0x2   :  { %13 = vsyncpa [#allocation6], 0  ;;  %s317_s18 = smov [#allocation4]   ;;  %s245_s22 = scalar_lea.hbm %s408_s0, 128 }
   0x3   :  { %s19_s19 = sshll.u32 %s317_s18, 4  ;;  %p246_p0 = scmp.ne.s32.totalorder %s408_s0, %s245_s22  ;;  %s20_s19 = int_to_ptr.vmem [resolvable:$true] %s19_s19 }
   0x4   :  { %p249_p1 = scmp.lt.u32.totalorder %s245_s22, %s408_s0 }
   0x6   :  { %p251_p2 = pnand %p249_p1, %p246_p0 }
   0x8   :  { %254 = shalt.err (!%p251_p2)
}
   0x9   :  { %s255_s27 = scalar_lea.vmem %s20_s19, 128  ;;  %p260_p4 = scmp.lt.s32.totalorder %s20_s19, %s20_s19 }
   0xa   :  { %p256_p3 = scmp.ne.s32.totalorder %s20_s19, %s255_s27  ;;  %p261_p5 = scmp.lt.s32.totalorder %s255_s27, %s255_s27 }
   0xc   :  { %p262_p6 = por %p261_p5, %p260_p4 }
   0xe   :  { %p263_p7 = pnand %p262_p6, %p256_p3 }
  0x10   :  { %266 = shalt.err (!%p263_p7)
}
  0x11   :  { %s318_s28 = smov 64   ;;  %s319_s29 = smov 4  }
  0x12   :  { %25 = dma.hbm_to_vmem [thread:$0]  %s408_s0, 128, %s20_s19, [#allocation5], %s318_s28, %s318_s28, %s319_s29  }
  0x13   :  { %s320_s7 = smov [#allocation7]   ;;  %s267_s11 = scalar_lea.hbm %s409_s1, 256 }
  0x14   :  { %s31_s8 = sshll.u32 %s320_s7, 4  ;;  %p268_p8 = scmp.ne.s32.totalorder %s409_s1, %s267_s11  ;;  %s32_s8 = int_to_ptr.vmem [resolvable:$true] %s31_s8 }
  0x15   :  { %p271_p9 = scmp.lt.u32.totalorder %s267_s11, %s409_s1 }
  0x17   :  { %p273_p10 = pnand %p271_p9, %p268_p8 }
  0x19   :  { %276 = shalt.err (!%p273_p10)
}
  0x1a   :  { %s277_s16 = scalar_lea.vmem %s32_s8, 256  ;;  %p282_p12 = scmp.lt.s32.totalorder %s32_s8, %s32_s8 }
  0x1b   :  { %p278_p11 = scmp.ne.s32.totalorder %s32_s8, %s277_s16  ;;  %p283_p13 = scmp.lt.s32.totalorder %s277_s16, %s277_s16 }
  0x1d   :  { %p284_p0 = por %p283_p13, %p282_p12 }
  0x1f   :  { %p285_p1 = pnand %p284_p0, %p278_p11 }
  0x21   :  { %288 = shalt.err (!%p285_p1)
}
  0x22   :  { %37 = dma.hbm_to_vmem [thread:$0]  %s409_s1, 256, %s32_s8, [#allocation8], %s318_s28, %s318_s28, %s319_s29  }
  0x23   :  { %311 = dma.done.wait [#allocation5], 128  }
  0x24   :  { %312 = vsyncadd [#allocation5], 4294967168 }
  0x25   :  { %313 = dma.done.wait [#allocation8], 256  }
  0x26   :  { %314 = vsyncadd [#allocation8], 4294967040  ;;  %vm53_vm0 = vcmask 1024   ;;  %v321_v0 = vmov 0.0   ;;  %vm322_vm1 = vmmov 0   ;;  %v236_v1 = vld [vmem:[#allocation7] sm:$0xff]  }
  0x27   :  { %55 = vst.msk [vmem:[#allocation3] sm:$0x3] %vm53_vm0, %v321_v0  ;;  %218 = vmatprep.subr.bf16.mxu0 %v321_v0  ;;  %222 = vmatprep.mubr.msk.bf16.mxu0 %vm322_vm1, %v321_v0  ;;  %v237_v2 = vld [vmem:[#allocation7 + $0x8] sm:$0xff]   ;;  %v238_v3 = vld [vmem:[#allocation4] sm:$0xff]   ;;  %vm79_vm2 = vcmask 261120   ;;  %v323_v4 = vmov -inf  }
  0x28   :  { %219 = vmatpush3.bf16.msra.mxu0 %v236_v1  ;;  %54 = vst.msk [vmem:[#allocation2] sm:$0x3] %vm53_vm0, %v323_v4  ;;  %v214_v21 = vld [vmem:[%s410_s2] ss:$0 sm:$0xff]  ;;  %vm150_vm3 = vcmask 1041409   ;;  %vm156_vm5 = vcmask 1041408  }
  0x29   :  { %220 = vmatprep.subr.bf16.mxu0 %v321_v0  ;;  %v145_v22 = vld [vmem:[%s411_s3] sm:$0x3]  ;;  %v324_v29 = vmov 0   ;;  %s325_s2 = smov [#allocation9]  }
  0x2a   :  { %vm146_vm4 = vcmp.eq.s32.totalorder %v145_v22, 1  ;;  %235 = vset.pattern.permute.xlu0 %v324_v29  ;;  %s196_s3 = sshll.u32 %s325_s2, 4  ;;  %s197_s3 = int_to_ptr.vmem [resolvable:$true] %s196_s3 }
  0x2b   :  { %s289_s21 = scalar_lea.vmem %s197_s3, 32  ;;  %p294_p3 = scmp.lt.s32.totalorder %s197_s3, %s197_s3 }
  0x2c   :  { %221 = vmatpush3.bf16.msra.mxu0 %v237_v2  ;;  %p290_p2 = scmp.ne.s32.totalorder %s197_s3, %s289_s21  ;;  %p295_p4 = scmp.lt.s32.totalorder %s289_s21, %s289_s21 }
  0x2e   :  { %p296_p5 = por %p295_p4, %p294_p3 }
  0x2f   :  { %223 = vmatmul.mubr.msk.bf16.vlgmr.msra.gmra.mrb[0].mxu0 %vm79_vm2, %v238_v3  ;;  %v155_v30 = vld [vmem:[#allocation2] sm:$0x3] }
  0x30   :  { %p297_p6 = pnand %p296_p5, %p290_p2 }
 0x102   :  { %v117_v5 = vpop.f32.mrb[0].mxu0 }
 0x103   :  { %v124_v6 = vrot.slane %v117_v5, 4  ;;  %v224_v7 = vpop.f32.mrb[1].mxu0 }
 0x104   :  { %v120_v8 = vpop.f32.mrb[2].mxu0 }
 0x105   :  { %v125_v9 = vmax.f32 %v117_v5, %v124_v6  ;;  %v130_v10 = vrot.slane %v120_v8, 4  ;;  %v225_v11 = vpop.f32.mrb[3].mxu0 }
 0x107   :  { %v126_v12 = vrot.slane %v125_v9, 2  ;;  %v131_v13 = vmax.f32 %v120_v8, %v130_v10 }
 0x109   :  { %v127_v14 = vmax.f32 %v125_v9, %v126_v12  ;;  %v132_v15 = vrot.slane %v131_v13, 2 }
 0x10b   :  { %v128_v16 = vrot.slane %v127_v14, 1  ;;  %v133_v17 = vmax.f32 %v131_v13, %v132_v15 }
 0x10d   :  { %v134_v18 = vrot.slane %v133_v17, 1  ;;  %v129_v19 = vmax.f32 %v127_v14, %v128_v16 }
 0x10f   :  { %v135_v20 = vmax.f32 %v133_v17, %v134_v18  ;;  %v143_v24 = vadd.f32 %v214_v21, %v129_v19 }
 0x111   :  { %v144_v23 = vadd.f32 %v214_v21, %v135_v20 }
 0x113   :  { %v149_v25 = vrot.slane %v144_v23, 7 }
 0x115   :  { %v151_v26 = vsel %vm150_vm3, %v149_v25, %v143_v24 }
 0x116   :  { %v153_v27 = vsel %vm146_vm4, -1e+10, %v151_v26 }
 0x117   :  { %v157_v28 = vsel %vm156_vm5, %v153_v27, -inf  ;;  %154 = vst [vmem:[#allocation9] sm:$0x3] %v153_v27 }
 0x118   :  { %158 = vmax.xlane.f32.xlu0 %v157_v28 }
 0x1a5   :  { %v159_v31 = vpop.xlane.xlu0 %158 }
 0x1a6   :  { %v160_v32 = vmax.f32 %v155_v30, %v159_v31 }
 0x1a8   :  { %v162_v33 = vsub.f32 %v155_v30, %v160_v32  ;;  %180 = vst.msk [vmem:[#allocation2] sm:$0x3] %vm53_vm0, %v160_v32  ;;  %168 = vperm.xlu0 %235, %v160_v32  }
 0x227   :  { %v169_v34 = vpop.permute.xlu0 %168 }
 0x228   :  { %v171_v35 = vsub.f32 %v153_v27, %v169_v34 }
 0x22a   :  { %v172_v36 = vmul.f32 1.442695, %v171_v35 }
 0x22c   :  { %239 = vpow2.f32 %v172_v36 }
 0x236   :  { %v240_v37 = vpop.eup %239 }
 0x237   :  { %v174_v38 = vsel %vm156_vm5, %v240_v37, 0.0 }
 0x238   :  { %175 = vadd.xlane.f32.xlu1 %v174_v38 }
 0x239   :  { %300 = shalt.err (!%p297_p6)
}
 0x23a   :  { %s301_s24 = scalar_lea.hbm %s412_s4, 32 }
 0x23b   :  { %p302_p7 = scmp.ne.s32.totalorder %s412_s4, %s301_s24  ;;  %p305_p8 = scmp.lt.u32.totalorder %s301_s24, %s412_s4 }
 0x23d   :  { %p307_p9 = pnand %p305_p8, %p302_p7 }
 0x23f   :  { %310 = shalt.err (!%p307_p9)
}
 0x240   :  { %199 = dma.vmem_to_hbm [thread:$0]  %s197_s3, 32, %s412_s4, [#allocation6]   ;;  %v163_v39 = vmul.f32 1.442695, %v162_v33  ;;  %v161_v41 = vld [vmem:[#allocation3] sm:$0x3] }
 0x241   :  { %v184_v48 = vld [vmem:[#allocation2] sm:$0x3] }
 0x242   :  { %241 = vpow2.f32 %v163_v39 }
 0x24c   :  { %v242_v40 = vpop.eup %241 }
 0x24d   :  { %v165_v42 = vmul.f32 %v242_v40, %v161_v41 }
 0x2c5   :  { %v176_v43 = vpop.xlane.xlu1 %175 }
 0x2c6   :  { %v177_v44 = vadd.f32 %v176_v43, %v165_v42 }
 0x2c8   :  { %179 = vst.msk [vmem:[#allocation3] sm:$0x3] %vm53_vm0, %v177_v44 }
 0x2cf   :  { %v185_v45 = vld [vmem:[#allocation3] sm:$0x3] }
 0x2d0   :  { %243 = vlog2.f32 %v185_v45 }
 0x2da   :  { %v244_v46 = vpop.eup %243 }
 0x2db   :  { %v187_v47 = vmul.f32 0.6931472, %v244_v46 }
 0x2dd   :  { %v188_v49 = vadd.f32 %v187_v47, %v184_v48 }
 0x2df   :  { %189 = vst.msk [vmem:[%s413_s5] sm:$0x3] %vm53_vm0, %v188_v49 }
 0x2e0   :  { %315 = dma.done.wait [#allocation6], 32  }
 0x2e1   :  { %316 = vsyncadd [#allocation6], 4294967264 }
 0x2e2   :  { %207 = vsyncpa [#allocation5], 1 }
 0x2e3   :  { %208 = vsyncpa [#allocation8], 1 }
 0x2e4   :  { %209 = vsyncpa [#allocation6], 1 }

</bundles_post_ra>
